<compile_context>
chip_gen: v7x
topology: tpu7x:2x2x1
jax: 0.10.0
libtpu: 0.0.40
codegen_flags: <defaults>
</compile_context>

<pallas_src>
import jax
import jax.numpy as jnp
from jax.experimental import pallas as pl
from jax.experimental.pallas import tpu as pltpu

LN_EPS = 1e-5
_HP = jax.lax.Precision.HIGHEST  # for wrapper folds / pure-JAX reference


def _round_up(a, b):
    return ((a + b - 1) // b) * b


def _cdiv(a, b):
    return -(-a // b)


def _layernorm(h, gamma, beta):
    mu = jnp.mean(h, axis=-1, keepdims=True)
    var = jnp.mean((h - mu) ** 2, axis=-1, keepdims=True)
    return (h - mu) * jax.lax.rsqrt(var + LN_EPS) * gamma + beta


def _make_kernel(pc, pd):
    """Kernel over lane-dense packed rows: (TM, pd) -> (TM, pd)."""

    def kernel(x_ref, w1_ref, wf_ref, a1_ref, a2_ref, c_ref, out_ref):
        x = x_ref[...]                       # (TM, pd)  packed rows
        c = c_ref[...]                       # (8, CW)   packed bias / LN vectors
        b1, g1, be1 = c[0:1, :pc], c[1:2, :pc], c[2:3, :pc]
        bf, g2, be2 = c[3:4, :pd], c[4:5, :pd], c[5:6, :pd]

        # compressor: block-diagonal Linear -> grouped LayerNorm -> ReLU
        h = jnp.dot(x, w1_ref[...], preferred_element_type=jnp.float32) + b1
        mu = jnp.dot(h, a1_ref[...], preferred_element_type=jnp.float32)
        d = h - mu
        var = jnp.dot(d * d, a1_ref[...], preferred_element_type=jnp.float32)
        h = d * jax.lax.rsqrt(var + LN_EPS) * g1 + be1
        h = jnp.maximum(h, 0.0)

        # coherence gate * replicator-mean * magnifier, folded into one matmul
        o = jnp.dot(h, wf_ref[...], preferred_element_type=jnp.float32) + bf
        mu2 = jnp.dot(o, a2_ref[...], preferred_element_type=jnp.float32)
        d2 = o - mu2
        var2 = jnp.dot(d2 * d2, a2_ref[...], preferred_element_type=jnp.float32)
        o = d2 * jax.lax.rsqrt(var2 + LN_EPS) * g2 + be2
        out_ref[...] = jax.nn.sigmoid(o)

    return kernel


def unipixel_forward(x, params, tm_max=2048):
    """x: (..., dimension) f32.  Returns output of same shape (..., dimension)."""
    dim = x.shape[-1]
    cdim = params["w1"].shape[1]
    x2d = x.reshape(-1, dim).astype(jnp.float32)
    n = x2d.shape[0]

    # ---- algebraic folding (exact, f32, done once outside the kernel) ----
    w_rep = jnp.mean(params["rep_w"], axis=0)                      # (C, C)
    b_rep = jnp.mean(params["rep_b"], axis=0)                      # (1, C)
    gate_s = jax.nn.sigmoid(params["gate"])                        # (1, C)
    w_fused = gate_s.reshape(cdim, 1) * jnp.dot(w_rep, params["wm"], precision=_HP)
    b_fused = jnp.dot(b_rep, params["wm"], precision=_HP) + params["bm"]

    # ---- lane-dense packing: view (N, D) as (N/P, P*D); block-diag weights --
    p = 128 // dim if (dim <= 128 and 128 % dim == 0) else 1
    pd, pc = p * dim, p * cdim
    eye_p = jnp.eye(p, dtype=jnp.float32)
    w1_bd = jnp.kron(eye_p, params["w1"])                          # (pd, pc)
    wf_bd = jnp.kron(eye_p, w_fused)                               # (pc, pd)
    # grouped-LayerNorm averaging matrices (group mean on the MXU, not XLU)
    a1 = jnp.kron(eye_p, jnp.full((cdim, cdim), 1.0 / cdim, jnp.float32))
    a2 = jnp.kron(eye_p, jnp.full((dim, dim), 1.0 / dim, jnp.float32))

    # pack all small bias / LN vectors into ONE (8, CW) constant operand
    cw = _round_up(max(pd, pc, 128), 128)

    def _row(v):
        v = v.reshape(1, -1)
        return jnp.pad(v, ((0, 0), (0, cw - v.shape[1])))

    const = jnp.concatenate(
        [_row(jnp.tile(params["b1"], (1, p))),
         _row(jnp.tile(params["g1"], (1, p))),
         _row(jnp.tile(params["be1"], (1, p))),
         _row(jnp.tile(b_fused, (1, p))),
         _row(jnp.tile(params["g2"], (1, p))),
         _row(jnp.tile(params["be2"], (1, p))),
         jnp.zeros((2, cw), jnp.float32)], axis=0)                 # (8, cw)

    # ---- row tiling on the packed layout ----
    n_packed = _cdiv(n, p)
    if n_packed > tm_max:
        tm = tm_max                                   # ~1 MiB f32 block per step
    elif n_packed > 8:
        tm = _round_up(_cdiv(n_packed, 2), 8)         # keep >=2 steps for 2 TCs
    else:
        tm = 8
    n_pad_packed = _round_up(n_packed, tm)
    grid = (n_pad_packed // tm,)
    n_pad_rows = n_pad_packed * p
    if n_pad_rows != n:
        x2d = jnp.pad(x2d, ((0, n_pad_rows - n), (0, 0)))
    x_packed = x2d.reshape(n_pad_packed, pd)          # free view (row-major)

    row_spec = pl.BlockSpec((tm, pd), lambda i: (i, 0))

    def const_spec(a):
        return pl.BlockSpec(a.shape, lambda i: (0,) * a.ndim)

    args = (x_packed, w1_bd, wf_bd, a1, a2, const)
    in_specs = [row_spec] + [const_spec(a) for a in args[1:]]

    weight_bytes = sum(int(a.size) * 4 for a in args[1:])
    cost = pl.CostEstimate(
        flops=int(2 * n_pad_packed * (pd * pc + pc * pd + 2 * pc * pc + 2 * pd * pd)),
        transcendentals=int(n_pad_packed * (2 * pd + pc)),
        bytes_accessed=int(2 * n_pad_packed * pd * 4 + weight_bytes),
    )

    out = pl.pallas_call(
        _make_kernel(pc, pd),
        out_shape=jax.ShapeDtypeStruct((n_pad_packed, pd), jnp.float32),
        grid=grid,
        in_specs=in_specs,
        out_specs=row_spec,
        compiler_params=pltpu.CompilerParams(
            dimension_semantics=("parallel",),
            vmem_limit_bytes=32 * 1024 * 1024),
        cost_estimate=cost,
    )(*args)

    return out.reshape(n_pad_rows, dim)[:n].reshape(x.shape)


def make_params(key, dimension, compression_ratio=0.5, replication_factor=2):
    cdim = int(dimension * compression_ratio)
    ks = jax.random.split(key, 8)

    def lin_init(k, fan_in, shape):
        bound = 1.0 / jnp.sqrt(fan_in)
        return jax.random.uniform(k, shape, jnp.float32, -bound, bound)

    return {
        # compressor Linear(dimension -> cdim), stored as (in, out)
        "w1": lin_init(ks[0], dimension, (dimension, cdim)),
        "b1": lin_init(ks[1], dimension, (1, cdim)),
        # compressor LayerNorm(cdim)
        "g1": jnp.ones((1, cdim), jnp.float32),
        "be1": jnp.zeros((1, cdim), jnp.float32),
        # coherence gate
        "gate": jnp.ones((1, cdim), jnp.float32),
        # replicators: Linear(cdim -> cdim) x R
        "rep_w": lin_init(ks[2], cdim, (replication_factor, cdim, cdim)),
        "rep_b": lin_init(ks[3], cdim, (replication_factor, 1, cdim)),
        # magnifier Linear(cdim -> dimension)
        "wm": lin_init(ks[4], cdim, (cdim, dimension)),
        "bm": lin_init(ks[5], cdim, (1, dimension)),
        # magnifier LayerNorm(dimension)
        "g2": jnp.ones((1, dimension), jnp.float32),
        "be2": jnp.zeros((1, dimension), jnp.float32),
    }


def unipixel_reference(x, params):
    """Pure-JAX reference of the original (unfused) forward pass."""
    dim = x.shape[-1]
    x2d = x.reshape(-1, dim).astype(jnp.float32)
    h = jnp.dot(x2d, params["w1"], precision=_HP) + params["b1"]
    h = _layernorm(h, params["g1"], params["be1"])
    h = jnp.maximum(h, 0.0)
    compressed = h * jax.nn.sigmoid(params["gate"])
    reps = [jnp.dot(compressed, params["rep_w"][i], precision=_HP) + params["rep_b"][i]
            for i in range(params["rep_w"].shape[0])]
    unified = jnp.mean(jnp.stack(reps), axis=0)
    o = jnp.dot(unified, params["wm"], precision=_HP) + params["bm"]
    o = _layernorm(o, params["g2"], params["be2"])
    return jax.nn.sigmoid(o).reshape(x.shape)


# TODO(synk): compute_compression_efficiency / _calculate_entropy use host-side
# numpy softmax+log2 on the flattened tensor and are not part of forward(); the
# optional return_compressed=True second output is likewise not produced here.

if __name__ == "__main__":
    key = jax.random.PRNGKey(0)
    k_x, k_x2, k_p = jax.random.split(key, 3)

    dimension = 32
    params = make_params(k_p, dimension, compression_ratio=0.5, replication_factor=2)

    # small shape (single grid step, padded to one 8x128 packed tile)
    x = jax.random.normal(k_x, (2, 8, dimension), jnp.float32)
    out = jax.block_until_ready(unipixel_forward(x, params))
    ref = unipixel_reference(x, params)
    assert out.shape == x.shape
    assert jnp.allclose(out, ref, atol=2e-3, rtol=2e-3), "mismatch vs reference (small)"

    # larger shape exercising multiple row tiles, lane packing and padding
    x_big = jax.random.normal(k_x2, (4, 300, dimension), jnp.float32)
    out_big = jax.block_until_ready(unipixel_forward(x_big, params))
    ref_big = unipixel_reference(x_big, params)
    assert out_big.shape == x_big.shape
    assert jnp.allclose(out_big, ref_big, atol=2e-3, rtol=2e-3), "mismatch vs reference (big)"

    print("KERNEL_OK")
</pallas_src>

<mosaic_0001>
module attributes {stable_mosaic.version = 11 : i64} {
  func.func @kernel(%arg0: i32, %arg1: memref<8x128xf32, #tpu.memory_space<vmem>>, %arg2: memref<128x64xf32, #tpu.memory_space<vmem>>, %arg3: memref<64x128xf32, #tpu.memory_space<vmem>>, %arg4: memref<64x64xf32, #tpu.memory_space<vmem>>, %arg5: memref<128x128xf32, #tpu.memory_space<vmem>>, %arg6: memref<8x128xf32, #tpu.memory_space<vmem>>, %arg7: memref<8x128xf32, #tpu.memory_space<vmem>>) attributes {dimension_semantics = [#tpu.dimension_semantics<parallel>], iteration_bounds = array<i64: 1>, scalar_prefetch = 0 : i64, scratch_operands = 0 : i64, tpu.core_type = #tpu.core_type<tc>, window_params = [{transform_indices = @transform_0, window_bounds = array<i64: 8, 128>}, {pipeline_mode = #tpu.pipeline_mode<synchronous>, transform_indices = @transform_1, window_bounds = array<i64: 128, 64>}, {pipeline_mode = #tpu.pipeline_mode<synchronous>, transform_indices = @transform_2, window_bounds = array<i64: 64, 128>}, {pipeline_mode = #tpu.pipeline_mode<synchronous>, transform_indices = @transform_3, window_bounds = array<i64: 64, 64>}, {pipeline_mode = #tpu.pipeline_mode<synchronous>, transform_indices = @transform_4, window_bounds = array<i64: 128, 128>}, {pipeline_mode = #tpu.pipeline_mode<synchronous>, transform_indices = @transform_5, window_bounds = array<i64: 8, 128>}, {transform_indices = @transform_6, window_bounds = array<i64: 8, 128>}]} {
    %c0 = arith.constant 0 : index
    %c0_0 = arith.constant 0 : index
    %0 = vector.load %arg1[%c0, %c0_0] : memref<8x128xf32, #tpu.memory_space<vmem>>, vector<8x128xf32>
    %c0_1 = arith.constant 0 : index
    %c0_2 = arith.constant 0 : index
    %1 = vector.load %arg6[%c0_1, %c0_2] : memref<8x128xf32, #tpu.memory_space<vmem>>, vector<8x128xf32>
    %2 = vector.extract_strided_slice %1 {offsets = [0, 0], sizes = [1, 64], strides = [1, 1]} : vector<8x128xf32> to vector<1x64xf32>
    %3 = vector.extract_strided_slice %1 {offsets = [1, 0], sizes = [1, 64], strides = [1, 1]} : vector<8x128xf32> to vector<1x64xf32>
    %4 = vector.extract_strided_slice %1 {offsets = [2, 0], sizes = [1, 64], strides = [1, 1]} : vector<8x128xf32> to vector<1x64xf32>
    %5 = vector.extract_strided_slice %1 {offsets = [3, 0], sizes = [1, 128], strides = [1, 1]} : vector<8x128xf32> to vector<1x128xf32>
    %6 = vector.extract_strided_slice %1 {offsets = [4, 0], sizes = [1, 128], strides = [1, 1]} : vector<8x128xf32> to vector<1x128xf32>
    %7 = vector.extract_strided_slice %1 {offsets = [5, 0], sizes = [1, 128], strides = [1, 1]} : vector<8x128xf32> to vector<1x128xf32>
    %c0_3 = arith.constant 0 : index
    %c0_4 = arith.constant 0 : index
    %8 = vector.load %arg2[%c0_3, %c0_4] : memref<128x64xf32, #tpu.memory_space<vmem>>, vector<128x64xf32>
    %cst = arith.constant dense<0.000000e+00> : vector<8x64xf32>
    %9 = tpu.matmul %0, %8, %cst {dimension_numbers = #tpu.dot_dimension_numbers<[1], [0], [0], [1], [0, 0, 1, 1], [], []>} : vector<8x128xf32>, vector<128x64xf32>, vector<8x64xf32> -> vector<8x64xf32>
    %10 = vector.broadcast %2 : vector<1x64xf32> to vector<8x64xf32>
    %11 = arith.addf %9, %10 : vector<8x64xf32>
    %c0_5 = arith.constant 0 : index
    %c0_6 = arith.constant 0 : index
    %12 = vector.load %arg4[%c0_5, %c0_6] : memref<64x64xf32, #tpu.memory_space<vmem>>, vector<64x64xf32>
    %cst_7 = arith.constant dense<0.000000e+00> : vector<8x64xf32>
    %13 = tpu.matmul %11, %12, %cst_7 {dimension_numbers = #tpu.dot_dimension_numbers<[1], [0], [0], [1], [0, 0, 1, 1], [], []>} : vector<8x64xf32>, vector<64x64xf32>, vector<8x64xf32> -> vector<8x64xf32>
    %14 = arith.subf %11, %13 : vector<8x64xf32>
    %15 = arith.mulf %14, %14 : vector<8x64xf32>
    %c0_8 = arith.constant 0 : index
    %c0_9 = arith.constant 0 : index
    %16 = vector.load %arg4[%c0_8, %c0_9] : memref<64x64xf32, #tpu.memory_space<vmem>>, vector<64x64xf32>
    %cst_10 = arith.constant dense<0.000000e+00> : vector<8x64xf32>
    %17 = tpu.matmul %15, %16, %cst_10 {dimension_numbers = #tpu.dot_dimension_numbers<[1], [0], [0], [1], [0, 0, 1, 1], [], []>} : vector<8x64xf32>, vector<64x64xf32>, vector<8x64xf32> -> vector<8x64xf32>
    %cst_11 = arith.constant 9.99999974E-6 : f32
    %18 = vector.broadcast %cst_11 : f32 to vector<8x64xf32>
    %19 = arith.addf %17, %18 : vector<8x64xf32>
    %20 = math.rsqrt %19 : vector<8x64xf32>
    %21 = arith.mulf %14, %20 : vector<8x64xf32>
    %22 = vector.broadcast %3 : vector<1x64xf32> to vector<8x64xf32>
    %23 = arith.mulf %21, %22 : vector<8x64xf32>
    %24 = vector.broadcast %4 : vector<1x64xf32> to vector<8x64xf32>
    %25 = arith.addf %23, %24 : vector<8x64xf32>
    %cst_12 = arith.constant 0.000000e+00 : f32
    %26 = vector.broadcast %cst_12 : f32 to vector<8x64xf32>
    %27 = arith.maximumf %25, %26 : vector<8x64xf32>
    %c0_13 = arith.constant 0 : index
    %c0_14 = arith.constant 0 : index
    %28 = vector.load %arg3[%c0_13, %c0_14] : memref<64x128xf32, #tpu.memory_space<vmem>>, vector<64x128xf32>
    %cst_15 = arith.constant dense<0.000000e+00> : vector<8x128xf32>
    %29 = tpu.matmul %27, %28, %cst_15 {dimension_numbers = #tpu.dot_dimension_numbers<[1], [0], [0], [1], [0, 0, 1, 1], [], []>} : vector<8x64xf32>, vector<64x128xf32>, vector<8x128xf32> -> vector<8x128xf32>
    %30 = vector.broadcast %5 : vector<1x128xf32> to vector<8x128xf32>
    %31 = arith.addf %29, %30 : vector<8x128xf32>
    %c0_16 = arith.constant 0 : index
    %c0_17 = arith.constant 0 : index
    %32 = vector.load %arg5[%c0_16, %c0_17] : memref<128x128xf32, #tpu.memory_space<vmem>>, vector<128x128xf32>
    %cst_18 = arith.constant dense<0.000000e+00> : vector<8x128xf32>
    %33 = tpu.matmul %31, %32, %cst_18 {dimension_numbers = #tpu.dot_dimension_numbers<[1], [0], [0], [1], [0, 0, 1, 1], [], []>} : vector<8x128xf32>, vector<128x128xf32>, vector<8x128xf32> -> vector<8x128xf32>
    %34 = arith.subf %31, %33 : vector<8x128xf32>
    %35 = arith.mulf %34, %34 : vector<8x128xf32>
    %c0_19 = arith.constant 0 : index
    %c0_20 = arith.constant 0 : index
    %36 = vector.load %arg5[%c0_19, %c0_20] : memref<128x128xf32, #tpu.memory_space<vmem>>, vector<128x128xf32>
    %cst_21 = arith.constant dense<0.000000e+00> : vector<8x128xf32>
    %37 = tpu.matmul %35, %36, %cst_21 {dimension_numbers = #tpu.dot_dimension_numbers<[1], [0], [0], [1], [0, 0, 1, 1], [], []>} : vector<8x128xf32>, vector<128x128xf32>, vector<8x128xf32> -> vector<8x128xf32>
    %cst_22 = arith.constant 9.99999974E-6 : f32
    %38 = vector.broadcast %cst_22 : f32 to vector<8x128xf32>
    %39 = arith.addf %37, %38 : vector<8x128xf32>
    %40 = math.rsqrt %39 : vector<8x128xf32>
    %41 = arith.mulf %34, %40 : vector<8x128xf32>
    %42 = vector.broadcast %6 : vector<1x128xf32> to vector<8x128xf32>
    %43 = arith.mulf %41, %42 : vector<8x128xf32>
    %44 = vector.broadcast %7 : vector<1x128xf32> to vector<8x128xf32>
    %45 = arith.addf %43, %44 : vector<8x128xf32>
    %46 = arith.negf %45 : vector<8x128xf32>
    %47 = math.exp %46 : vector<8x128xf32>
    %cst_23 = arith.constant 1.000000e+00 : f32
    %48 = vector.broadcast %cst_23 : f32 to vector<8x128xf32>
    %49 = arith.addf %48, %47 : vector<8x128xf32>
    %50 = arith.divf %48, %49 : vector<8x128xf32>
    %c0_24 = arith.constant 0 : index
    %c0_25 = arith.constant 0 : index
    %51 = vector.load %arg7[%c0_24, %c0_25] : memref<8x128xf32, #tpu.memory_space<vmem>>, vector<8x128xf32>
    tpu.vector_store %arg7[%c0_24, %c0_25], %50 {strides = array<i32>} : memref<8x128xf32, #tpu.memory_space<vmem>>, vector<8x128xf32>,
    return
  }
  func.func @transform_0(%arg0: i32) -> (i32, i32) {
    %c0_i32 = arith.constant 0 : i32
    %c0_i32_0 = arith.constant 0 : i32
    return %arg0, %c0_i32 : i32, i32
  }
  func.func @transform_1(%arg0: i32) -> (i32, i32) {
    %c0_i32 = arith.constant 0 : i32
    %c0_i32_0 = arith.constant 0 : i32
    %c0_i32_1 = arith.constant 0 : i32
    return %c0_i32, %c0_i32_0 : i32, i32
  }
  func.func @transform_2(%arg0: i32) -> (i32, i32) {
    %c0_i32 = arith.constant 0 : i32
    %c0_i32_0 = arith.constant 0 : i32
    %c0_i32_1 = arith.constant 0 : i32
    return %c0_i32, %c0_i32_0 : i32, i32
  }
  func.func @transform_3(%arg0: i32) -> (i32, i32) {
    %c0_i32 = arith.constant 0 : i32
    %c0_i32_0 = arith.constant 0 : i32
    %c0_i32_1 = arith.constant 0 : i32
    return %c0_i32, %c0_i32_0 : i32, i32
  }
  func.func @transform_4(%arg0: i32) -> (i32, i32) {
    %c0_i32 = arith.constant 0 : i32
    %c0_i32_0 = arith.constant 0 : i32
    %c0_i32_1 = arith.constant 0 : i32
    return %c0_i32, %c0_i32_0 : i32, i32
  }
  func.func @transform_5(%arg0: i32) -> (i32, i32) {
    %c0_i32 = arith.constant 0 : i32
    %c0_i32_0 = arith.constant 0 : i32
    %c0_i32_1 = arith.constant 0 : i32
    return %c0_i32, %c0_i32_0 : i32, i32
  }
  func.func @transform_6(%arg0: i32) -> (i32, i32) {
    %c0_i32 = arith.constant 0 : i32
    %c0_i32_0 = arith.constant 0 : i32
    return %arg0, %c0_i32 : i32, i32
  }
}

</mosaic_0001>

<bundles_post_ra>
// kernel: tpu_custom_call.1
= control target key start
LH: loop header
LB: loop body
LE: loop exit
PB: predicated region body
PF: predicated region fallthrough
CT: control target
= control target key end

     0   :  { %11 = vsyncpa [#allocation3], 0  ;;  %s1256_s0 = inlined_call_operand.vmem [shape: f32[8,128], index: 0, kind: input, shape index: {}]   ;;  %s1257_s1 = inlined_call_operand.vmem [shape: f32[128,64], index: 1, kind: input, shape index: {}]   ;;  %s1258_s2 = inlined_call_operand.vmem [shape: f32[64,128], index: 2, kind: input, shape index: {}]   ;;  %s1259_s3 = inlined_call_operand.hbm [shape: f32[64,64], index: 3, kind: input, shape index: {}]   ;;  %s1260_s4 = inlined_call_operand.vmem [shape: f32[128,128], index: 4, kind: input, shape index: {}]   ;;  %s1261_s5 = inlined_call_operand.vmem [shape: f32[8,128], index: 5, kind: input, shape index: {}]   ;;  %s1262_s6 = inlined_call_operand.hbm [shape: f32[8,128], index: 6, kind: output, shape index: {}]  }
   0x1   :  { %12 = vsyncpa [#allocation4], 0  ;;  %s992_s21 = smov [#allocation2]   ;;  %s944_s25 = scalar_lea.hbm %s1259_s3, 1024 }
   0x2   :  { %s24_s22 = sshll.u32 %s992_s21, 4  ;;  %p945_p0 = scmp.ne.s32.totalorder %s1259_s3, %s944_s25  ;;  %s25_s22 = int_to_ptr.vmem [resolvable:$true] %s24_s22 }
   0x3   :  { %p948_p1 = scmp.lt.u32.totalorder %s944_s25, %s1259_s3 }
   0x5   :  { %p950_p2 = pnand %p948_p1, %p945_p0 }
   0x7   :  { %953 = shalt.err (!%p950_p2)
}
   0x8   :  { %s954_s30 = scalar_lea.vmem %s25_s22, 1024  ;;  %p959_p4 = scmp.lt.s32.totalorder %s25_s22, %s25_s22 }
   0x9   :  { %p955_p3 = scmp.ne.s32.totalorder %s25_s22, %s954_s30  ;;  %p960_p5 = scmp.lt.s32.totalorder %s954_s30, %s954_s30 }
   0xb   :  { %p961_p6 = por %p960_p5, %p959_p4 }
   0xd   :  { %p962_p7 = pnand %p961_p6, %p955_p3 }
   0xf   :  { %965 = shalt.err (!%p962_p7)
}
  0x10   :  { %s993_s7 = smov 128   ;;  %s994_s8 = smov 8  }
  0x11   :  { %30 = dma.hbm_to_vmem [thread:$0]  %s1259_s3, 1024, %s25_s22, [#allocation3], %s993_s7, %s993_s7, %s994_s8  }
  0x12   :  { %988 = dma.done.wait [#allocation3], 1024  }
  0x13   :  { %989 = vsyncadd [#allocation3], 4294966272  ;;  %v995_v0 = vmov 0.0|0.0   ;;  %vm996_vm0 = vmmov 0   ;;  %v997_v1 = vmov 0.0   ;;  %v40_v2 = vld [vmem:[%s1257_s1] sm:$0xff]  ;;  %v56_v39 = vlaneseq }
  0x14   :  { %821 = vmatprep.subr.bf16.mxu0 %v995_v0  ;;  %691 = vmatprep.mubr.msk.f32.mxu0 %vm996_vm0, %v997_v1  ;;  %v41_v3 = vld [vmem:[%s1257_s1 + $0x8] sm:$0xff]  ;;  %v42_v4 = vld [vmem:[%s1257_s1 + $0x10] sm:$0xff]  ;;  %v43_v6 = vld [vmem:[%s1257_s1 + $0x18] sm:$0xff]  ;;  %vm138_vm1 = vcmask 523264  }
  0x15   :  { %845 = vmatprep.subr.bf16.mxu1 %v995_v0  ;;  %710 = vmatprep.mubr.msk.f32.mxu1 %vm996_vm0, %v997_v1  ;;  %v822_v5 = vpack.c.bf16 %v41_v3, %v40_v2  ;;  %v825_v7 = vpack.c.bf16 %v43_v6, %v42_v4  ;;  %v44_v8 = vld [vmem:[%s1257_s1 + $0x20] sm:$0xff]  ;;  %v45_v9 = vld [vmem:[%s1257_s1 + $0x28] sm:$0xff]  ;;  %v132_v12 = vld [vmem:[#allocation2 + $0x10] sm:$0xff]  ;;  %v1117_v40 = vshrl.u32 %v56_v39, 7 }
  0x16   :  { %v130_v10 = vld [vmem:[#allocation2] sm:$0xff]  ;;  %v131_v11 = vld [vmem:[#allocation2 + $0x8] sm:$0xff]  ;;  %v133_v13 = vld [vmem:[#allocation2 + $0x18] sm:$0xff]  ;;  %v828_v14 = vpack.c.bf16 %v45_v9, %v44_v8 }
  0x17   :  { %823 = vmatpush3.bf16.msra.mxu0 %v822_v5  ;;  %v846_v15 = vpack.c.bf16 %v131_v11, %v130_v10  ;;  %v46_v16 = vld [vmem:[%s1257_s1 + $0x30] sm:$0xff]  ;;  %v47_v17 = vld [vmem:[%s1257_s1 + $0x38] sm:$0xff]  ;;  %v849_v18 = vpack.c.bf16 %v133_v13, %v132_v12  ;;  %v134_v19 = vld [vmem:[#allocation2 + $0x20] sm:$0xff]  ;;  %v58_v41 = vsub.s32 0, %v1117_v40 }
  0x18   :  { %824 = vmatprep.subr.bf16.mxu0 %v995_v0  ;;  %v135_v20 = vld [vmem:[#allocation2 + $0x28] sm:$0xff]  ;;  %v831_v21 = vpack.c.bf16 %v47_v17, %v46_v16  ;;  %v48_v22 = vld [vmem:[%s1257_s1 + $0x40] sm:$0xff]  ;;  %v50_v26 = vld [vmem:[%s1257_s1 + $0x50] sm:$0xff] }
  0x19   :  { %847 = vmatpush3.bf16.msra.mxu1 %v846_v15  ;;  %v49_v23 = vld [vmem:[%s1257_s1 + $0x48] sm:$0xff]  ;;  %v852_v24 = vpack.c.bf16 %v135_v20, %v134_v19  ;;  %v51_v27 = vld [vmem:[%s1257_s1 + $0x58] sm:$0xff]  ;;  %v52_v29 = vld [vmem:[%s1257_s1 + $0x60] sm:$0xff] }
  0x1a   :  { %848 = vmatprep.subr.bf16.mxu1 %v995_v0  ;;  %v834_v25 = vpack.c.bf16 %v49_v23, %v48_v22  ;;  %v837_v28 = vpack.c.bf16 %v51_v27, %v50_v26  ;;  %v53_v30 = vld [vmem:[%s1257_s1 + $0x68] sm:$0xff]  ;;  %v54_v32 = vld [vmem:[%s1257_s1 + $0x70] sm:$0xff]  ;;  %v55_v33 = vld [vmem:[%s1257_s1 + $0x78] sm:$0xff]  ;;  %v296_v26 = vsub.s32 2, %v1117_v40 }
  0x1b   :  { %826 = vmatpush3.bf16.msra.mxu0 %v825_v7  ;;  %v840_v31 = vpack.c.bf16 %v53_v30, %v52_v29  ;;  %v843_v34 = vpack.c.bf16 %v55_v33, %v54_v32  ;;  %v38_v35 = vld [vmem:[%s1256_s0] sm:$0xff]  ;;  %v136_v36 = vld [vmem:[#allocation2 + $0x30] sm:$0xff]  ;;  %v137_v37 = vld [vmem:[#allocation2 + $0x38] sm:$0xff] }
  0x1c   :  { %827 = vmatprep.subr.bf16.mxu0 %v995_v0  ;;  %v855_v38 = vpack.c.bf16 %v137_v37, %v136_v36  ;;  %v1123_v42 = vld [vmem:[%s1261_s5] sm:$0xff]  ;;  %v301_v52 = vld [vmem:[%s1258_s2 + $0x8] sm:$0xff]  ;;  %v302_v54 = vld [vmem:[%s1258_s2 + $0x10] sm:$0xff]  ;;  %v310_v36 = vsub.s32 3, %v1117_v40 }
  0x1d   :  { %850 = vmatpush3.bf16.msra.mxu1 %v849_v18  ;;  %v59_v43 = vrot.slane %v1123_v42, %v58_v41  ;;  %v300_v51 = vld [vmem:[%s1258_s2] sm:$0xff]  ;;  %v303_v55 = vld [vmem:[%s1258_s2 + $0x18] sm:$0xff]  ;;  %v305_v58 = vld [vmem:[%s1258_s2 + $0x28] sm:$0xff]  ;;  %v297_v30 = vrot.slane %v1123_v42, %v296_v26 }
  0x1e   :  { %851 = vmatprep.subr.bf16.mxu1 %v995_v0  ;;  %v870_v53 = vpack.c.bf16 %v301_v52, %v300_v51  ;;  %v873_v56 = vpack.c.bf16 %v303_v55, %v302_v54  ;;  %v304_v57 = vld [vmem:[%s1258_s2 + $0x20] sm:$0xff]  ;;  %v306_v60 = vld [vmem:[%s1258_s2 + $0x30] sm:$0xff]  ;;  %v307_v61 = vld [vmem:[%s1258_s2 + $0x38] sm:$0xff]  ;;  %v311_v37 = vrot.slane %v1123_v42, %v310_v36 }
  0x1f   :  { %829 = vmatpush3.bf16.msra.mxu0 %v828_v14  ;;  %v876_v59 = vpack.c.bf16 %v305_v58, %v304_v57  ;;  %v879_v62 = vpack.c.bf16 %v307_v61, %v306_v60  ;;  %v385_v63 = vld [vmem:[%s1260_s4] sm:$0xff]  ;;  %v386_v2 = vld [vmem:[%s1260_s4 + $0x8] sm:$0xff]  ;;  %v387_v3 = vld [vmem:[%s1260_s4 + $0x10] sm:$0xff] }
  0x20   :  { %830 = vmatprep.subr.bf16.mxu0 %v995_v0  ;;  %v882_v4 = vpack.c.bf16 %v386_v2, %v385_v63  ;;  %v388_v5 = vld [vmem:[%s1260_s4 + $0x18] sm:$0xff]  ;;  %v389_v7 = vld [vmem:[%s1260_s4 + $0x20] sm:$0xff]  ;;  %v390_v8 = vld [vmem:[%s1260_s4 + $0x28] sm:$0xff] }
  0x21   :  { %853 = vmatpush3.bf16.msra.mxu1 %v852_v24  ;;  %v885_v6 = vpack.c.bf16 %v388_v5, %v387_v3  ;;  %v888_v9 = vpack.c.bf16 %v390_v8, %v389_v7  ;;  %v391_v10 = vld [vmem:[%s1260_s4 + $0x30] sm:$0xff]  ;;  %v392_v11 = vld [vmem:[%s1260_s4 + $0x38] sm:$0xff]  ;;  %v393_v13 = vld [vmem:[%s1260_s4 + $0x40] sm:$0xff] }
  0x22   :  { %854 = vmatprep.subr.bf16.mxu1 %v995_v0  ;;  %v891_v12 = vpack.c.bf16 %v392_v11, %v391_v10  ;;  %v394_v14 = vld [vmem:[%s1260_s4 + $0x48] sm:$0xff]  ;;  %v395_v16 = vld [vmem:[%s1260_s4 + $0x50] sm:$0xff]  ;;  %v396_v17 = vld [vmem:[%s1260_s4 + $0x58] sm:$0xff] }
  0x23   :  { %832 = vmatpush3.bf16.msra.mxu0 %v831_v21  ;;  %v397_v19 = vld [vmem:[%s1260_s4 + $0x60] sm:$0xff]  ;;  %v398_v20 = vld [vmem:[%s1260_s4 + $0x68] sm:$0xff] }
  0x24   :  { %833 = vmatprep.subr.bf16.mxu0 %v995_v0  ;;  %v900_v21 = vpack.c.bf16 %v398_v20, %v397_v19 }
  0x25   :  { %856 = vmatpush3.bf16.msra.mxu1 %v855_v38 }
  0x26   :  { %857 = vmatprep.subr.bf16.mxu1 %v995_v0 }
  0x27   :  { %835 = vmatpush3.bf16.msra.mxu0 %v834_v25  ;;  %v291_v25 = vsub.s32 1, %v1117_v40 }
  0x28   :  { %836 = vmatprep.subr.bf16.mxu0 %v995_v0 }
  0x29   :  { %v292_v27 = vrot.slane %v1123_v42, %v291_v25 }
  0x2b   :  { %838 = vmatpush3.bf16.msra.mxu0 %v837_v28 }
  0x2c   :  { %839 = vmatprep.subr.bf16.mxu0 %v995_v0 }
  0x2f   :  { %841 = vmatpush3.bf16.msra.mxu0 %v840_v31 }
  0x30   :  { %842 = vmatprep.subr.bf16.mxu0 %v995_v0 }
  0x33   :  { %844 = vmatpush3.bf16.msra.mxu0 %v843_v34  ;;  %v400_v34 = vld [vmem:[%s1260_s4 + $0x78] sm:$0xff] }
  0x34   :  { %869 = vmatprep.subr.bf16.mxu0 %v995_v0 }
  0x36   :  { %692 = vmatmul.mubr.f32.vlgmr.msra.gmra.mrb[0].mxu0 %v38_v35 }
  0x37   :  { %748 = vmatprep.mubr.msk.f32.mxu0 %vm996_vm0, %v997_v1  ;;  %871 = vmatpush3.bf16.msra.mxu0 %v870_v53 }
  0x38   :  { %872 = vmatprep.subr.bf16.mxu0 %v995_v0 }
  0x3b   :  { %874 = vmatpush3.bf16.msra.mxu0 %v873_v56 }
  0x3c   :  { %875 = vmatprep.subr.bf16.mxu0 %v995_v0 }
  0x3f   :  { %877 = vmatpush3.bf16.msra.mxu0 %v876_v59 }
  0x40   :  { %878 = vmatprep.subr.bf16.mxu0 %v995_v0 }
  0x43   :  { %880 = vmatpush3.bf16.msra.mxu0 %v879_v62 }
  0x44   :  { %905 = vmatprep.subr.bf16.mxu0 %v995_v0 }
 0x109   :  { %v126_v44 = vpop.f32.mrb[0].mxu0 }
 0x10a   :  { %v127_v45 = vadd.f32 %v126_v44, %v59_v43  ;;  %v693_v46 = vpop.f32.mrb[1].mxu0 }
 0x10c   :  { %711 = vmatmul.mubr.msk.f32.vlgmr.msra.gmra.mrb[0].mxu1 %vm138_vm1, %v127_v45 }
 0x10d   :  { %859 = vmatpush3.bf16.msra.mxu1 %v846_v15  ;;  %729 = vmatprep.mubr.msk.f32.mxu1 %vm996_vm0, %v997_v1  ;;  %v894_v15 = vpack.c.bf16 %v394_v14, %v393_v13 }
 0x10e   :  { %860 = vmatprep.subr.bf16.mxu1 %v995_v0 }
 0x111   :  { %862 = vmatpush3.bf16.msra.mxu1 %v849_v18  ;;  %v897_v18 = vpack.c.bf16 %v396_v17, %v395_v16 }
 0x112   :  { %863 = vmatprep.subr.bf16.mxu1 %v995_v0 }
 0x115   :  { %865 = vmatpush3.bf16.msra.mxu1 %v852_v24 }
 0x116   :  { %866 = vmatprep.subr.bf16.mxu1 %v995_v0 }
 0x119   :  { %868 = vmatpush3.bf16.msra.mxu1 %v855_v38 }
 0x11a   :  { %881 = vmatprep.subr.bf16.mxu1 %v995_v0 }
 0x1df   :  { %v208_v47 = vpop.f32.mrb[0].mxu1 }
 0x1e0   :  { %v1133_v48 = vsub.f32 %v127_v45, %v208_v47  ;;  %v712_v49 = vpop.f32.mrb[1].mxu1 }
 0x1e1   :  { %v547_v49 = vsub.s32 4, %v1117_v40 }
 0x1e2   :  { %v213_v50 = vmul.f32 %v1133_v48, %v1133_v48 }
 0x1e3   :  { %v548_v51 = vrot.slane %v1123_v42, %v547_v49 }
 0x1e4   :  { %730 = vmatmul.mubr.msk.f32.vlgmr.msra.gmra.mrb[2].mxu1 %vm138_vm1, %v213_v50  ;;  %v552_v50 = vsub.s32 5, %v1117_v40 }
 0x1e5   :  { %783 = vmatprep.mubr.msk.f32.mxu1 %vm996_vm0, %v997_v1  ;;  %883 = vmatpush3.bf16.msra.mxu1 %v882_v4 }
 0x1e6   :  { %884 = vmatprep.subr.bf16.mxu1 %v995_v0  ;;  %v553_v54 = vrot.slane %v1123_v42, %v552_v50 }
 0x1e9   :  { %886 = vmatpush3.bf16.msra.mxu1 %v885_v6 }
 0x1ea   :  { %887 = vmatprep.subr.bf16.mxu1 %v995_v0 }
 0x1ed   :  { %889 = vmatpush3.bf16.msra.mxu1 %v888_v9 }
 0x1ee   :  { %890 = vmatprep.subr.bf16.mxu1 %v995_v0 }
 0x1f1   :  { %892 = vmatpush3.bf16.msra.mxu1 %v891_v12 }
 0x1f2   :  { %893 = vmatprep.subr.bf16.mxu1 %v995_v0 }
 0x1f5   :  { %895 = vmatpush3.bf16.msra.mxu1 %v894_v15 }
 0x1f6   :  { %896 = vmatprep.subr.bf16.mxu1 %v995_v0 }
 0x1f9   :  { %898 = vmatpush3.bf16.msra.mxu1 %v897_v18 }
 0x1fa   :  { %899 = vmatprep.subr.bf16.mxu1 %v995_v0 }
 0x1fd   :  { %901 = vmatpush3.bf16.msra.mxu1 %v900_v21 }
 0x1fe   :  { %902 = vmatprep.subr.bf16.mxu1 %v995_v0 }
 0x2b7   :  { %v283_v22 = vpop.f32.mrb[2].mxu1 }
 0x2b8   :  { %v284_v23 = vadd.f32 1e-05, %v283_v22  ;;  %v731_v24 = vpop.f32.mrb[3].mxu1 }
 0x2ba   :  { %936 = vrsqrt.f32 %v284_v23 }
 0x2c4   :  { %v937_v28 = vpop.eup %936 }
 0x2c5   :  { %v288_v29 = vmul.f32 %v937_v28, %v1133_v48 }
 0x2c7   :  { %v293_v31 = vmul.f32 %v292_v27, %v288_v29 }
 0x2c9   :  { %v298_v32 = vadd.f32 %v297_v30, %v293_v31 }
 0x2cb   :  { %v299_v33 = vmax.f32 %v298_v32, 0.0 }
 0x2cd   :  { %749 = vmatmul.mubr.msk.f32.vlgmr.msra.gmra.mrb[2].mxu0 %vm138_vm1, %v299_v33 }
 0x2ce   :  { %907 = vmatpush3.bf16.msra.mxu0 %v882_v4  ;;  %818 = vmatprep.mubr.msk.f32.mxu0 %vm996_vm0, %v997_v1  ;;  %v399_v1 = vld [vmem:[%s1260_s4 + $0x70] sm:$0xff]  ;;  %s998_s4 = smov [#allocation5]  }
 0x2cf   :  { %908 = vmatprep.subr.bf16.mxu0 %v995_v0  ;;  %v903_v35 = vpack.c.bf16 %v400_v34, %v399_v1  ;;  %s568_s3 = sshll.u32 %s998_s4, 4  ;;  %s569_s3 = int_to_ptr.vmem [resolvable:$true] %s568_s3 }
 0x2d0   :  { %s966_s13 = scalar_lea.vmem %s569_s3, 128  ;;  %p971_p9 = scmp.lt.s32.totalorder %s569_s3, %s569_s3 }
 0x2d1   :  { %904 = vmatpush3.bf16.msra.mxu1 %v903_v35  ;;  %p967_p8 = scmp.ne.s32.totalorder %s569_s3, %s966_s13  ;;  %p972_p10 = scmp.lt.s32.totalorder %s966_s13, %s966_s13 }
 0x2d2   :  { %910 = vmatpush3.bf16.msra.mxu0 %v885_v6 }
 0x2d3   :  { %911 = vmatprep.subr.bf16.mxu0 %v995_v0  ;;  %p973_p11 = por %p972_p10, %p971_p9 }
 0x2d5   :  { %p974_p12 = pnand %p973_p11, %p967_p8 }
 0x2d6   :  { %913 = vmatpush3.bf16.msra.mxu0 %v888_v9 }
 0x2d7   :  { %914 = vmatprep.subr.bf16.mxu0 %v995_v0 }
 0x2da   :  { %916 = vmatpush3.bf16.msra.mxu0 %v891_v12 }
 0x2db   :  { %917 = vmatprep.subr.bf16.mxu0 %v995_v0 }
 0x2de   :  { %919 = vmatpush3.bf16.msra.mxu0 %v894_v15 }
 0x2df   :  { %920 = vmatprep.subr.bf16.mxu0 %v995_v0 }
 0x2e2   :  { %922 = vmatpush3.bf16.msra.mxu0 %v897_v18 }
 0x2e3   :  { %923 = vmatprep.subr.bf16.mxu0 %v995_v0 }
 0x2e6   :  { %925 = vmatpush3.bf16.msra.mxu0 %v900_v21 }
 0x2e7   :  { %926 = vmatprep.subr.bf16.mxu0 %v995_v0 }
 0x2ea   :  { %928 = vmatpush3.bf16.msra.mxu0 %v903_v35 }
 0x3a0   :  { %v381_v38 = vpop.f32.mrb[2].mxu0 }
 0x3a1   :  { %v382_v39 = vadd.f32 %v381_v38, %v311_v37  ;;  %v750_v41 = vpop.f32.mrb[3].mxu0 }
 0x3a3   :  { %784 = vmatmul.mubr.f32.vlgmr.msra.gmra.mrb[4].mxu1 %v382_v39 }
 0x476   :  { %v467_v0 = vpop.f32.mrb[4].mxu1 }
 0x477   :  { %v471_v43 = vsub.f32 %v382_v39, %v467_v0  ;;  %v785_v44 = vpop.f32.mrb[5].mxu1 }
 0x479   :  { %v472_v45 = vmul.f32 %v471_v43, %v471_v43 }
 0x47b   :  { %819 = vmatmul.mubr.f32.vlgmr.msra.gmra.mrb[4].mxu0 %v472_v45 }
 0x54e   :  { %v539_v46 = vpop.f32.mrb[4].mxu0 }
 0x54f   :  { %v540_v47 = vadd.f32 1e-05, %v539_v46  ;;  %v820_v48 = vpop.f32.mrb[5].mxu0 }
 0x551   :  { %938 = vrsqrt.f32 %v540_v47 }
 0x55b   :  { %v939_v52 = vpop.eup %938 }
 0x55c   :  { %v544_v53 = vmul.f32 %v939_v52, %v471_v43 }
 0x55e   :  { %v549_v55 = vmul.f32 %v548_v51, %v544_v53 }
 0x560   :  { %v554_v56 = vadd.f32 %v553_v54, %v549_v55 }
 0x562   :  { %v580_v57 = vmul.f32 -1.442695, %v554_v56 }
 0x564   :  { %940 = vpow2.f32 %v580_v57 }
 0x56e   :  { %v941_v58 = vpop.eup %940 }
 0x56f   :  { %v558_v59 = vadd.f32 1.0, %v941_v58 }
 0x571   :  { %942 = vrcp.f32 %v558_v59 }
 0x57b   :  { %v943_v60 = vpop.eup %942 }
 0x57c   :  { %561 = vst [vmem:[#allocation5] sm:$0xff] %v943_v60 }
 0x57d   :  { %977 = shalt.err (!%p974_p12)
}
 0x57e   :  { %s978_s16 = scalar_lea.hbm %s1262_s6, 128 }
 0x57f   :  { %p979_p13 = scmp.ne.s32.totalorder %s1262_s6, %s978_s16  ;;  %p982_p0 = scmp.lt.u32.totalorder %s978_s16, %s1262_s6 }
 0x581   :  { %p984_p1 = pnand %p982_p0, %p979_p13 }
 0x583   :  { %987 = shalt.err (!%p984_p1)
}
 0x584   :  { %571 = dma.vmem_to_hbm [thread:$0]  %s569_s3, 128, %s1262_s6, [#allocation4]  }
 0x585   :  { %990 = dma.done.wait [#allocation4], 128  }
 0x586   :  { %991 = vsyncadd [#allocation4], 4294967168 }
 0x587   :  { %575 = vsyncpa [#allocation3], 1 }
 0x588   :  { %576 = vsyncpa [#allocation4], 1 }

</bundles_post_ra>
